<compile_context>
chip_gen: v5e
topology: v5e:2x2
jax: 0.10.0
libtpu: 0.0.40
codegen_flags: <defaults>
</compile_context>

<pallas_src>
import jax
import jax.numpy as jnp
from jax.experimental import pallas as pl
from jax.experimental.pallas import tpu as pltpu


def _chomp_copy_kernel(x_ref, o_ref):
    # Both refs are (TR, TL) VMEM tiles indexed by the same (row, L_out) tile
    # id: straight copy, no masking / slicing in the body.  Partial edge tiles
    # (rows % TR, L_out % TL) are handled by Pallas' partial-block masking.
    o_ref[...] = x_ref[...]


def _round_up(a: int, b: int) -> int:
    return ((a + b - 1) // b) * b


def _default_tiles(rows: int, l_out: int, itemsize: int, sub: int,
                   per_buf_bytes: int) -> tuple[int, int]:
    """Pick (TR, TL): full-width lane-dense TL first, then rows from budget."""
    # Widest 128-aligned TL that still leaves room for at least `sub` rows.
    tl_cap = max(128, (per_buf_bytes // (sub * itemsize)) // 128 * 128)
    tl = min(_round_up(l_out, 128), tl_cap)
    # Spend the rest of the per-buffer budget on rows (sublane-aligned).
    tr = max(sub, (per_buf_bytes // (tl * itemsize)) // sub * sub)
    tr = min(tr, _round_up(rows, sub))
    return tr, tl


def chomp1d(x: jax.Array, chomp_size: int, *, tr: int | None = None,
            tl: int | None = None) -> jax.Array:
    """Equivalent of Chomp1d(chomp_size)(x) for x of shape (N, C, L)."""
    assert x.ndim == 3, "expected (N, C, L)"
    assert chomp_size >= 0, "chomp_size must be non-negative"
    n, c, l = x.shape
    l_out = l - chomp_size

    # Match PyTorch slicing semantics for degenerate sizes:
    #   chomp_size == 0  -> x[:, :, :-0] == x[:, :, :0]  (empty last dim)
    #   chomp_size >= L  -> empty last dim (negative stop clamps to 0)
    if chomp_size == 0 or l_out <= 0:
        return x[:, :, :0]

    rows = n * c
    itemsize = jnp.dtype(x.dtype).itemsize
    # Sublane packing multiple: 8 for 32-bit, 16 for bf16/fp16, 32 for 8-bit.
    sub = max(8, 32 // itemsize)

    # Collapse (N, C) -> rows: free row-major reshape on both ends.
    x2 = x.reshape(rows, l)

    per_buf_bytes = 8 * 1024 * 1024  # ~8 MiB per buffer (review: v7x sweet spot)
    if tr is None or tl is None:
        d_tr, d_tl = _default_tiles(rows, l_out, itemsize, sub, per_buf_bytes)
        if tr is None:
            tr = d_tr
        if tl is None:
            tl = d_tl
    assert tr % sub == 0, f"tr must be a multiple of {sub} for dtype {x.dtype}"
    assert tl % 128 == 0, "tl must be a multiple of 128"

    # Megacore (v7x): make sure the row grid axis has >=2 points when the rows
    # allow it, so both TensorCores get work.  Cost on single-TC chips is at
    # most one extra ~0.35 us grid step.
    if pl.cdiv(rows, tr) < 2 and rows >= 2 * sub:
        tr = _round_up(pl.cdiv(rows, 2), sub)

    grid = (pl.cdiv(rows, tr), pl.cdiv(l_out, tl))

    out2 = pl.pallas_call(
        _chomp_copy_kernel,
        out_shape=jax.ShapeDtypeStruct((rows, l_out), x.dtype),
        grid_spec=pl.GridSpec(
            grid=grid,
            # Input indexed by the OUTPUT tile map: chomped tail columns beyond
            # the last needed 128-lane tile are never read from HBM.
            in_specs=[pl.BlockSpec((tr, tl), lambda i, j: (i, j))],
            out_specs=pl.BlockSpec((tr, tl), lambda i, j: (i, j)),
        ),
        compiler_params=pltpu.CompilerParams(
            # Pure copy, no reduction axis: both grid axes parallel (megacore).
            dimension_semantics=("parallel", "parallel"),
            # 2 operands x double-buffered x 8 MiB tiles ~= 32 MiB; 40 MiB is
            # under v7x's 64 MiB physical VMEM and fine on v5e/v6e.
            vmem_limit_bytes=40 * 1024 * 1024,
        ),
        # Pure memory op: help XLA overlap it with neighboring compute.
        cost_estimate=pl.CostEstimate(
            flops=0, transcendentals=0,
            bytes_accessed=2 * rows * l_out * itemsize),
    )(x2)

    return out2.reshape(n, c, l_out)

# TODO(synk): in a full model, fold the chomp into the producing Conv1d
# (causal-only padding) or let XLA fuse the slice -- that removes the HBM
# round-trip entirely, which no standalone copy kernel can do.


if __name__ == "__main__":
    key = jax.random.PRNGKey(0)

    # Shapes consistent with a Conv1d activation: batch=2, channels=4, length=16.
    N, C, L = 2, 4, 16
    chomp_size = 3  # Chomp1d(chomp_size) -- no learned parameters

    x = jax.random.normal(key, (N, C, L), dtype=jnp.float32)
    out = jax.block_until_ready(chomp1d(x, chomp_size))

    ref = x[:, :, :-chomp_size]
    assert out.shape == (N, C, L - chomp_size), out.shape
    assert out.dtype == x.dtype
    assert jnp.array_equal(out, ref), "mismatch vs reference slice"

    # Multi-column-tile path with a partial remainder tile (small explicit
    # tile sizes so the multi-tile path is covered cheaply).
    x2 = jax.random.normal(jax.random.PRNGKey(1), (2, 4, 300), dtype=jnp.float32)
    out2 = jax.block_until_ready(chomp1d(x2, 10, tr=8, tl=128))
    assert jnp.array_equal(out2, x2[:, :, :-10]), "mismatch on tiled case"

    # Dtype-aware sublane rounding (bf16 -> 16-row multiples) + partial rows.
    x3 = jax.random.normal(jax.random.PRNGKey(2), (2, 6, 300), dtype=jnp.bfloat16)
    out3 = jax.block_until_ready(chomp1d(x3, 44))
    assert out3.shape == (2, 6, 256) and out3.dtype == jnp.bfloat16
    assert jnp.array_equal(out3, x3[:, :, :-44]), "mismatch on bf16 case"

    # Megacore row-split path: rows >= 2*sublane so TR is halved -> 2 grid rows.
    x4 = jax.random.normal(jax.random.PRNGKey(3), (2, 16, 40), dtype=jnp.float32)
    out4 = jax.block_until_ready(chomp1d(x4, 8))
    assert jnp.array_equal(out4, x4[:, :, :-8]), "mismatch on megacore case"

    print("KERNEL_OK")
</pallas_src>

<mosaic_0001>
module attributes {stable_mosaic.version = 11 : i64} {
  func.func @_chomp_copy_kernel(%arg0: i32, %arg1: i32, %arg2: memref<8x128xf32, #tpu.memory_space<vmem>>, %arg3: memref<8x128xf32, #tpu.memory_space<vmem>>) attributes {dimension_semantics = [#tpu.dimension_semantics<parallel>, #tpu.dimension_semantics<parallel>], iteration_bounds = array<i64: 1, 1>, scalar_prefetch = 0 : i64, scratch_operands = 0 : i64, tpu.core_type = #tpu.core_type<tc>, window_params = [{transform_indices = @transform_0, window_bounds = array<i64: 8, 128>}, {transform_indices = @transform_1, window_bounds = array<i64: 8, 128>}]} {
    %c0 = arith.constant 0 : index
    %c0_0 = arith.constant 0 : index
    %0 = vector.load %arg2[%c0, %c0_0] : memref<8x128xf32, #tpu.memory_space<vmem>>, vector<8x128xf32>
    %c0_1 = arith.constant 0 : index
    %c0_2 = arith.constant 0 : index
    %1 = vector.load %arg3[%c0_1, %c0_2] : memref<8x128xf32, #tpu.memory_space<vmem>>, vector<8x128xf32>
    tpu.vector_store %arg3[%c0_1, %c0_2], %0 {strides = array<i32>} : memref<8x128xf32, #tpu.memory_space<vmem>>, vector<8x128xf32>,
    return
  }
  func.func @transform_0(%arg0: i32, %arg1: i32) -> (i32, i32) {
    %c0_i32 = arith.constant 0 : i32
    return %arg0, %arg1 : i32, i32
  }
  func.func @transform_1(%arg0: i32, %arg1: i32) -> (i32, i32) {
    %c0_i32 = arith.constant 0 : i32
    return %arg0, %arg1 : i32, i32
  }
}

</mosaic_0001>

<bundles_post_ra>
// kernel: tpu_custom_call.1
= control target key start
LH: loop header
LB: loop body
LE: loop exit
PB: predicated region body
PF: predicated region fallthrough
CT: control target
= control target key end

     0   :  { %6 = vsyncpa [#allocation3], 0  ;;  %s114_s0 = inlined_call_operand.hbm [shape: f32[8,16], index: 0, kind: input, shape index: {}]   ;;  %s115_s1 = inlined_call_operand.hbm [shape: f32[8,13], index: 1, kind: output, shape index: {}]  }
   0x1   :  { %7 = vsyncpa [#allocation4], 0  ;;  %s13_s8 = sshll.u32 %s114_s0, 4  ;;  %s96_s9 = smov [#allocation2]   ;;  %s14_s8 = int_to_ptr.hbm [resolvable:$true] %s13_s8 }
   0x2   :  { %s15_s10 = sshll.u32 %s96_s9, 4  ;;  %s16_s10 = int_to_ptr.vmem [resolvable:$true] %s15_s10 }
   0x3   :  { %18 = dma.hbm_to_vmem [thread:$0]  %s14_s8, 128, %s16_s10, [#allocation3]  }
   0x4   :  { %92 = dma.done.wait [#allocation3], 128  }
   0x5   :  { %93 = vsyncadd [#allocation3], 4294967168  ;;  %s97_s11 = smov [#allocation5]   ;;  %s32_s15 = sshll.u32 %s115_s1, 4  ;;  %v23_v0 = vld [vmem:[#allocation2] sm:$0xff]  ;;  %s33_s15 = int_to_ptr.hbm [resolvable:$true] %s32_s15 }
   0x6   :  { %s30_s12 = sshll.u32 %s97_s11, 4  ;;  %24 = vst [vmem:[#allocation5] sm:$0xff] %v23_v0  ;;  %s31_s12 = int_to_ptr.vmem [resolvable:$true] %s30_s12 }
   0x7   :  { %35 = dma.vmem_to_hbm [thread:$0]  %s31_s12, 128, %s33_s15, [#allocation4]  }
   0x8   :  { %94 = dma.done.wait [#allocation4], 128  }
   0x9   :  { %95 = vsyncadd [#allocation4], 4294967168 }
   0xa   :  { %40 = vsyncpa [#allocation3], 1 }
   0xb   :  { %41 = vsyncpa [#allocation4], 1 }

</bundles_post_ra>
